<compile_context>
chip_gen: v6e
topology: v6e:2x2x1
jax: 0.10.0
libtpu: 0.0.40
codegen_flags: <defaults>
</compile_context>

<pallas_src>
import jax
import jax.numpy as jnp
from jax.experimental import pallas as pl
from jax.experimental.pallas import tpu as pltpu


def _round_up(n: int, m: int) -> int:
    return ((n + m - 1) // m) * m


def nn_2_1_1_kernel(p_ref, x_ref, y_ref):
    # p_ref: SMEM (5,) f32 = [w1[0,0], w1[0,1], b1, w2[0,0], b2]
    # x_ref: VMEM (2, tr, 128) f32 -- feature-major, batch dense over (sublane, lane)
    # y_ref: VMEM (tr, 128) f32
    w10 = p_ref[0]
    w11 = p_ref[1]
    b1 = p_ref[2]
    w2 = p_ref[3]
    b2 = p_ref[4]

    x0 = x_ref[0]  # (tr, 128)
    x1 = x_ref[1]  # (tr, 128)

    # Hidden layer: h = sigmoid(x @ W1^T + b1)  -> 3 VPU ops + 1 EUP sigmoid per elem.
    h = jax.nn.sigmoid(x0 * w10 + x1 * w11 + b1)
    # Output layer: y = sigmoid(h @ W2^T + b2)  -> 2 VPU ops + 1 EUP sigmoid per elem.
    y_ref[...] = jax.nn.sigmoid(h * w2 + b2).astype(y_ref.dtype)


def reference_forward(x, w1, b1, w2, b2):
    h = jax.nn.sigmoid(x @ w1.T + b1)
    return jax.nn.sigmoid(h @ w2.T + b2)


_FAST_PATH_MAX_B = 1 << 16  # below this, the fused XLA expression is strictly cheaper
_TR_MAX = 2048              # max tile rows: 2 MiB input block + 1 MiB output block


def nn_2_1_1_forward(x, w1, b1, w2, b2, *, feature_major=False, force_kernel=False):
    """Forward pass of NN_2_1_1.

    x: (B, 2) f32 (PyTorch layout), or (2, B) f32 if feature_major=True (skips the
       host-side transpose pass; preferred when the producer keeps activations
       feature-major).
    Weights use the nn.Linear convention: w1 (1, 2), b1 (1,), w2 (1, 1), b2 (1,).
    Returns y of shape (B, 1).
    """
    if feature_major:
        assert x.shape[0] == 2
        B = x.shape[1]
    else:
        assert x.shape[1] == 2
        B = x.shape[0]

    # Small-batch fast path: launch/pad overhead dominates there.
    if (B < _FAST_PATH_MAX_B) and not force_kernel:
        x_bm = x.T if feature_major else x
        return reference_forward(x_bm.astype(jnp.float32), w1, b1, w2, b2)

    # ---------------- kernel path ----------------
    r_rows = (B + 127) // 128                                 # rows of 128 batch elems
    tr = min(_TR_MAX, _round_up(max(r_rows // 8, 1), 8))      # keep >= ~8 grid steps
    r_pad = _round_up(r_rows, tr)
    n_pad = r_pad * 128
    grid = (r_pad // tr,)

    x_fm = x if feature_major else x.T                        # (2, B)
    xt = (
        jnp.zeros((2, n_pad), jnp.float32)
        .at[:, :B]
        .set(x_fm.astype(jnp.float32))
        .reshape(2, r_pad, 128)
    )

    # Pack the 5 scalar parameters into one SMEM-resident array (scalar prefetch).
    params = jnp.concatenate(
        [w1.reshape(-1), b1.reshape(-1), w2.reshape(-1), b2.reshape(-1)]
    ).astype(jnp.float32)

    grid_spec = pltpu.PrefetchScalarGridSpec(
        num_scalar_prefetch=1,
        grid=grid,
        in_specs=[pl.BlockSpec((2, tr, 128), lambda i, p: (0, i, 0))],
        out_specs=pl.BlockSpec((tr, 128), lambda i, p: (i, 0)),
    )

    cost = pl.CostEstimate(
        flops=8 * n_pad,
        transcendentals=2 * n_pad,
        bytes_accessed=12 * n_pad,
    )

    y_tiles = pl.pallas_call(
        nn_2_1_1_kernel,
        out_shape=jax.ShapeDtypeStruct((r_pad, 128), jnp.float32),
        grid_spec=grid_spec,
        compiler_params=pltpu.CompilerParams(
            dimension_semantics=("parallel",),
            vmem_limit_bytes=32 * 1024 * 1024,
        ),
        cost_estimate=cost,
    )(params, xt)

    # (r_pad, 128) -> (B, 1): reshape is free, slice is contiguous, no transpose.
    return y_tiles.reshape(n_pad)[:B].reshape(B, 1)


if __name__ == "__main__":
    key = jax.random.PRNGKey(0)
    kx, kw1, kb1, kw2, kb2 = jax.random.split(key, 5)

    # Shapes from nn.Linear(2, 1) and nn.Linear(1, 1).
    w1 = jax.random.normal(kw1, (1, 2), dtype=jnp.float32)
    b1 = jax.random.normal(kb1, (1,), dtype=jnp.float32)
    w2 = jax.random.normal(kw2, (1, 1), dtype=jnp.float32)
    b2 = jax.random.normal(kb2, (1,), dtype=jnp.float32)

    # 1) Kernel path (forced), modest non-aligned batch to exercise padding/tiling.
    B = 4096 + 37
    x = jax.random.normal(kx, (B, 2), dtype=jnp.float32)
    y = jax.block_until_ready(nn_2_1_1_forward(x, w1, b1, w2, b2, force_kernel=True))
    y_ref = reference_forward(x, w1, b1, w2, b2)
    assert y.shape == (B, 1)
    assert jnp.allclose(y, y_ref, atol=1e-5, rtol=1e-5)

    # 2) Auto path (small-batch XLA fast path), matching the original tiny-batch usage.
    xs = jax.random.normal(kx, (8, 2), dtype=jnp.float32)
    ys = jax.block_until_ready(nn_2_1_1_forward(xs, w1, b1, w2, b2))
    assert ys.shape == (8, 1)
    assert jnp.allclose(ys, reference_forward(xs, w1, b1, w2, b2), atol=1e-5, rtol=1e-5)

    print("KERNEL_OK")
</pallas_src>

<mosaic_0001>
module attributes {stable_mosaic.version = 11 : i64} {
  func.func @nn_2_1_1_kernel(%arg0: i32, %arg1: memref<5xf32, #tpu.memory_space<smem>>, %arg2: memref<2x8x128xf32, #tpu.memory_space<vmem>>, %arg3: memref<8x128xf32, #tpu.memory_space<vmem>>) attributes {dimension_semantics = [#tpu.dimension_semantics<parallel>], iteration_bounds = array<i64: 5>, scalar_prefetch = 1 : i64, scratch_operands = 0 : i64, tpu.core_type = #tpu.core_type<tc>, window_params = [{transform_indices = @transform_0, window_bounds = array<i64: 2, 8, 128>}, {transform_indices = @transform_1, window_bounds = array<i64: 8, 128>}]} {
    %c0 = arith.constant 0 : index
    %0 = memref.load %arg1[%c0] : memref<5xf32, #tpu.memory_space<smem>>
    %c1 = arith.constant 1 : index
    %1 = memref.load %arg1[%c1] : memref<5xf32, #tpu.memory_space<smem>>
    %c2 = arith.constant 2 : index
    %2 = memref.load %arg1[%c2] : memref<5xf32, #tpu.memory_space<smem>>
    %c3 = arith.constant 3 : index
    %3 = memref.load %arg1[%c3] : memref<5xf32, #tpu.memory_space<smem>>
    %c4 = arith.constant 4 : index
    %4 = memref.load %arg1[%c4] : memref<5xf32, #tpu.memory_space<smem>>
    %c0_0 = arith.constant 0 : index
    %c0_1 = arith.constant 0 : index
    %c0_2 = arith.constant 0 : index
    %5 = vector.load %arg2[%c0_0, %c0_1, %c0_2] : memref<2x8x128xf32, #tpu.memory_space<vmem>>, vector<1x8x128xf32>
    %6 = vector.shape_cast %5 : vector<1x8x128xf32> to vector<8x128xf32>
    %c1_3 = arith.constant 1 : index
    %c0_4 = arith.constant 0 : index
    %c0_5 = arith.constant 0 : index
    %7 = vector.load %arg2[%c1_3, %c0_4, %c0_5] : memref<2x8x128xf32, #tpu.memory_space<vmem>>, vector<1x8x128xf32>
    %8 = vector.shape_cast %7 : vector<1x8x128xf32> to vector<8x128xf32>
    %9 = vector.broadcast %0 : f32 to vector<8x128xf32>
    %10 = arith.mulf %6, %9 : vector<8x128xf32>
    %11 = vector.broadcast %1 : f32 to vector<8x128xf32>
    %12 = arith.mulf %8, %11 : vector<8x128xf32>
    %13 = arith.addf %10, %12 : vector<8x128xf32>
    %14 = vector.broadcast %2 : f32 to vector<8x128xf32>
    %15 = arith.addf %13, %14 : vector<8x128xf32>
    %16 = arith.negf %15 : vector<8x128xf32>
    %17 = math.exp %16 : vector<8x128xf32>
    %cst = arith.constant 1.000000e+00 : f32
    %18 = vector.broadcast %cst : f32 to vector<8x128xf32>
    %19 = arith.addf %18, %17 : vector<8x128xf32>
    %20 = arith.divf %18, %19 : vector<8x128xf32>
    %21 = vector.broadcast %3 : f32 to vector<8x128xf32>
    %22 = arith.mulf %20, %21 : vector<8x128xf32>
    %23 = vector.broadcast %4 : f32 to vector<8x128xf32>
    %24 = arith.addf %22, %23 : vector<8x128xf32>
    %25 = arith.negf %24 : vector<8x128xf32>
    %26 = math.exp %25 : vector<8x128xf32>
    %cst_6 = arith.constant 1.000000e+00 : f32
    %27 = vector.broadcast %cst_6 : f32 to vector<8x128xf32>
    %28 = arith.addf %27, %26 : vector<8x128xf32>
    %29 = arith.divf %27, %28 : vector<8x128xf32>
    %c0_7 = arith.constant 0 : index
    %c0_8 = arith.constant 0 : index
    %30 = vector.load %arg3[%c0_7, %c0_8] : memref<8x128xf32, #tpu.memory_space<vmem>>, vector<8x128xf32>
    tpu.vector_store %arg3[%c0_7, %c0_8], %29 {strides = array<i32>} : memref<8x128xf32, #tpu.memory_space<vmem>>, vector<8x128xf32>,
    return
  }
  func.func @transform_0(%arg0: i32, %arg1: memref<5xf32, #tpu.memory_space<smem>>) -> (i32, i32, i32) {
    %c0_i32 = arith.constant 0 : i32
    %c0_i32_0 = arith.constant 0 : i32
    %c0_i32_1 = arith.constant 0 : i32
    return %c0_i32, %arg0, %c0_i32_0 : i32, i32, i32
  }
  func.func @transform_1(%arg0: i32, %arg1: memref<5xf32, #tpu.memory_space<smem>>) -> (i32, i32) {
    %c0_i32 = arith.constant 0 : i32
    %c0_i32_0 = arith.constant 0 : i32
    return %arg0, %c0_i32 : i32, i32
  }
}

</mosaic_0001>

<bundles_post_ra>
// kernel: tpu_custom_call.1
= control target key start
LH: loop header
LB: loop body
LE: loop exit
PB: predicated region body
PF: predicated region fallthrough
CT: control target
= control target key end

     0   :  { %s436_s9 = smov [#allocation3]   ;;  %s607_s0 = inlined_call_operand.hbm [shape: f32[5], index: 0, kind: input, shape index: {}]   ;;  %s608_s1 = inlined_call_operand.hbm [shape: f32[2,40,128], index: 1, kind: input, shape index: {}]   ;;  %s609_s2 = inlined_call_operand.hbm [shape: f32[40,128], index: 2, kind: output, shape index: {}]  }
   0x1   :  { %8 = dma.hbm_to_smem %s607_s0, 16, %s436_s9, [#allocation2] }
   0x2   :  { %410 = dma.done.wait [#allocation2], 16 }
   0x3   :  { %411 = vsyncadd [#allocation2], 4294967280 }
   0x4   :  { %10 = sfence }
   0x5   :  { %11 = vsyncpa [#allocation5], 0 }
   0x6   :  { %13 = vsyncpa [#allocation5 + $0x1], 0 }
   0x7   :  { %14 = vsyncpa [#allocation6], 0 }
   0x8   :  { %16 = vsyncpa [#allocation6 + $0x1], 0  ;;  %s460_s12 = smov 0   ;;  %s462_s13 = smov 0  }
   0x9   :  { %s464_s14 = smov 0   ;;  %s466_s15 = smov 0  }
   0xa LB: > { %s481_s0 = sadd.s32 4294967295, %s434_s15   ;;  %s255_s16 = sadd.s32 4294967294, %s434_s15   ;;  %s434_s15 = sphi %s466_s15, %s624_s15   ;;  %s430_s14 = sphi %s464_s14, %s623_s14   ;;  %s426_s13 = sphi %s462_s13, %s622_s13   ;;  %s422_s12 = sphi %s460_s12, %s621_s12  }
   0xb   : > { %s485_s17 = sadd.s32 1, %s434_s15   ;;  %s29_s18 = sadd.s32 1, %s430_s14 }
   0xc   : > { %s26_s19 = ssub.s32 %s434_s15, %s485_s17  ;;  %p36_p0 = scmp.ne.s32.totalorder %s430_s14, %s426_s13 }
   0xd   : > { %p27_p1 = scmp.eq.s32.totalorder %s26_s19, 0  ;;  %p37_p2 = scmp.eq.s32.totalorder %s434_s15, 0 }
   0xe   : > { %p42_p3 = scmp.ne.s32.totalorder %s426_s13, %s422_s12  ;;  %p43_p4 = scmp.eq.s32.totalorder %s481_s0, 0 }
   0xf   : > { %s497_s20 = scalar_select %p27_p1, %s430_s14, %s29_s18  }
  0x10   : > { %p499_p5 = por %p37_p2, %p36_p0  ;;  %p503_p6 = por %p43_p4, %p42_p3 }
  0x11   : > { %p66_p7 = scmp.eq.s32.totalorder %s481_s0, 4  ;;  %p72_p8 = scmp.eq.s32.totalorder %s255_s16, 4 }
  0x12   : > { %s613_s22 = scalar_select %p503_p6, 1, 0 }
  0x13   : > { %p286_p9 = scmp.lt.s32.totalorder %s434_s15, 5  ;;  %p509_p10 = por %p66_p7, %p36_p0 }
  0x14   : > { %p513_p11 = por %p72_p8, %p42_p3  ;;  %s92_s25 = sand.u32 1, %s430_s14  }
  0x15   : > { %s614_s23 = scalar_select %p509_p10, 1, 0 }
  0x16   : > { %s615_s24 = scalar_select %p513_p11, 1, 0 }
  0x17   : > { %s259_s26 = sshll.u32 %s434_s15, 7  ;;  %s258_s27 = sshll.u32 %s92_s25, 4 }
  0x18   : > { %s522_s30 = scalar_lea.hbm %s608_s1, %s259_s26  ;;  %s96_s3 = scalar_lea.vmem [#allocation4], %s258_s27 }
  0x19   : > { %s102_s4 = sshll.u32 %s96_s3, 4  ;;  %p526_p12 = pnand %p286_p9, %p499_p5  ;;  %s530_s4 = int_to_ptr.vmem [resolvable:$true] %s102_s4 }
  0x1a   : > { %s533_s6 = scalar_lea.sflag [#allocation5], %s92_s25  ;;  %s340_s7 = scalar_lea.hbm %s522_s30, 256 }
  0x1b   : > { %p341_p0 = scmp.ne.s32.totalorder %s522_s30, %s340_s7  ;;  %p342_p1 = pneg %p526_p12 }
  0x1c   : > { %s345_s10 = scalar_lea.hbm %s608_s1, 1280  ;;  %p346_p4 = scmp.lt.s32.totalorder %s522_s30, %s608_s1 }
  0x1d   : > { %p343_p2 = pnand %p342_p1, %p341_p0  ;;  %p347_p5 = scmp.lt.s32.totalorder %s345_s10, %s340_s7 }
  0x1f   : > { %p344_p3 = pneg %p343_p2  ;;  %p348_p7 = por %p347_p5, %p346_p4 }
  0x21   : > { %p349_p8 = pnand %p348_p7, %p344_p3 }
  0x23   : > { %352 = shalt.err (!%p349_p8)
}
  0x24   : > { %s353_s18 = scalar_lea.vmem %s530_s4, 256  ;;  %s437_s19 = smov [#allocation4]  }
  0x25   : > { %p354_p9 = scmp.ne.s32.totalorder %s530_s4, %s353_s18  ;;  %s358_s21 = sshll.u32 %s437_s19, 4  ;;  %s359_s21 = int_to_ptr.vmem [resolvable:$false] %s358_s21 }
  0x26   : > { %s360_s25 = scalar_lea.vmem %s359_s21, 512  ;;  %p361_p2 = scmp.lt.s32.totalorder %s530_s4, %s359_s21 }
  0x27   : > { %p356_p13 = pnand %p354_p9, %p342_p1  ;;  %p362_p11 = scmp.lt.s32.totalorder %s360_s25, %s353_s18 }
  0x29   : > { %p357_p0 = pneg %p356_p13  ;;  %p363_p10 = por %p362_p11, %p361_p2 }
  0x2b   : > { %p364_p6 = pnand %p363_p10, %p357_p0 }
  0x2d   : > { %367 = shalt.err (!%p364_p6)
}
  0x2e   : > { %s438_s26 = smov 640   ;;  %s439_s27 = smov 128  }
  0x2f   : > { %s440_s28 = smov 8   ;;  %p110_p13 = scmp.lt.s32.totalorder %s434_s15, 6 }
  0x30   : > { %281 = dma.hbm_to_vmem [thread:$0]  (!%p526_p12), %s522_s30, 256, %s530_s4, %s533_s6, %s438_s26, %s439_s27, %s440_s28  }
  0x31   : > { %p617_p1 = scmp.ge.s32.totalorder %s434_s15, 1 }
  0x33   : > { %p111_p3 = pnand %p617_p1, %p110_p13 }
  0x34   : > { %s558_s29 = sand.u32 (!%p111_p3), 1, %s426_s13   ;;  %p618_p6 = scmp.ne.s32.totalorder (!%p111_p3), %s613_s22, 0 }
  0x35   : > { %114 = sbr.rel (%p111_p3) target bundleno = 154 (0x9a), region = 24  ;;  %s261_s3 = sshll.u32 (!%p111_p3), %s558_s29, 4 }
  0x36   : > { %s117_s7 = scalar_lea.sflag (!%p111_p3), [#allocation5], %s558_s29  ;;  %s120_s8 = scalar_lea.vmem (!%p111_p3), [#allocation4], %s261_s3 }
  0x3a   : > { %413 = dma.done.wait (%p618_p6), %s117_s7, 256  }
  0x3b   : > { %415 = vsyncadd (%p618_p6), %s117_s7, 4294967040  ;;  %s139_s5 = sld [smem:[#allocation3]]  ;;  %v144_v0 = vld [vmem:[%s120_s8] sm:$0xff]  ;;  %v267_v1 = vld [vmem:[%s120_s8 + $0x8] sm:$0xff]  ;;  %s262_s9 = sshll.u32 %s558_s29, 3 }
  0x3c   : > { %s263_s30 = sld [smem:[#allocation3 + $0x1]]  ;;  %s138_s10 = scalar_lea.vmem [#allocation7], %s262_s9 }
  0x3d   : > { %s264_s4 = sld [smem:[#allocation3 + $0x2]]  ;;  %s185_s11 = sshll.u32 %s138_s10, 4  ;;  %s568_s11 = int_to_ptr.vmem [resolvable:$true] %s185_s11 }
  0x3e   : > { %s265_s22 = sld [smem:[#allocation3 + $0x3]]  ;;  %s271_s16 = sshll.u32 %s481_s0, 7 }
  0x3f   : > { %s266_s6 = sld [smem:[#allocation3 + $0x4]]  ;;  %s183_s21 = scalar_lea.hbm %s609_s2, %s271_s16 }
  0x40   : > { %s172_s25 = scalar_lea.sflag [#allocation6], %s558_s29  ;;  %s368_s26 = scalar_lea.vmem %s568_s11, 128 }
  0x41   : > { %v147_v2 = vstv %s139_s5  ;;  %p369_p10 = scmp.ne.s32.totalorder %s568_s11, %s368_s26  ;;  %p619_p11 = scmp.ne.s32.totalorder %s614_s23, 0 }
  0x42   : > { %v148_v3 = vmul.f32 %v147_v2, %v144_v0  ;;  %v149_v4 = vstv %s263_s30  ;;  %s441_s27 = smov [#allocation7]  }
  0x43   : > { %v150_v5 = vmul.f32 %v267_v1, %v149_v4  ;;  %v152_v6 = vstv %s264_s4  ;;  %p370_p12 = pnand %p369_p10, %p619_p11  ;;  %s372_s28 = sshll.u32 %s441_s27, 4  ;;  %s373_s28 = int_to_ptr.vmem [resolvable:$false] %s372_s28 }
  0x44   : > { %v160_v12 = vstv %s265_s22  ;;  %s374_s0 = scalar_lea.vmem %s373_s28, 256  ;;  %p375_p5 = scmp.lt.s32.totalorder %s568_s11, %s373_s28 }
  0x45   : > { %v151_v7 = vadd.f32 %v150_v5, %v148_v3  ;;  %v162_v14 = vstv %s266_s6  ;;  %p371_p4 = pneg %p370_p12  ;;  %p376_p7 = scmp.lt.s32.totalorder %s374_s0, %s368_s26 }
  0x47   : > { %v153_v8 = vadd.f32 %v152_v6, %v151_v7  ;;  %p377_p8 = por %p376_p7, %p375_p5 }
  0x49   : > { %v268_v9 = vmul.f32 -1.442695, %v153_v8  ;;  %p378_p9 = pnand %p377_p8, %p371_p4 }
  0x4b   : > { %324 = vpow2.f32 %v268_v9 }
  0x58   : > { %v325_v10 = vpop.eup %324 }
  0x59   : > { %v157_v11 = vadd.f32 1.0, %v325_v10 }
  0x5b   : > { %326 = vrcp.f32 %v157_v11 }
  0x68   : > { %v327_v13 = vpop.eup %326 }
  0x69   : > { %v161_v15 = vmul.f32 %v327_v13, %v160_v12 }
  0x6b   : > { %v163_v16 = vadd.f32 %v162_v14, %v161_v15 }
  0x6d   : > { %v269_v17 = vmul.f32 -1.442695, %v163_v16 }
  0x6f   : > { %328 = vpow2.f32 %v269_v17 }
  0x7c   : > { %v329_v18 = vpop.eup %328 }
  0x7d   : > { %v167_v19 = vadd.f32 1.0, %v329_v18 }
  0x7f   : > { %330 = vrcp.f32 %v167_v19 }
  0x8c   : > { %v331_v20 = vpop.eup %330 }
  0x8d   : > { %170 = vst [vmem:[%s138_s10] sm:$0xff] %v331_v20 }
  0x8e   : > { %381 = shalt.err (!%p378_p9)
}
  0x8f   : > { %s382_s3 = scalar_lea.hbm %s183_s21, 128  ;;  %s386_s8 = scalar_lea.hbm %s609_s2, 640 }
  0x90   : > { %p383_p0 = scmp.ne.s32.totalorder %s183_s21, %s382_s3  ;;  %p387_p1 = scmp.lt.s32.totalorder %s183_s21, %s609_s2 }
  0x91   : > { %p388_p3 = scmp.lt.s32.totalorder %s386_s8, %s382_s3 }
  0x92   : > { %p384_p2 = pnand %p383_p0, %p619_p11 }
  0x93   : > { %p389_p6 = por %p388_p3, %p387_p1 }
  0x94   : > { %p385_p13 = pneg %p384_p2 }
  0x96   : > { %p390_p10 = pnand %p389_p6, %p385_p13 }
  0x98   : > { %393 = shalt.err (!%p390_p10)
}
  0x99   : > { %276 = dma.vmem_to_hbm [thread:$0]  (%p619_p11), %s568_s11, 128, %s183_s21, %s172_s25  }
  0x9a PF: > { %p287_p12 = scmp.ge.s32.totalorder %s434_s15, 2  ;;  %s197_s4 = sand.u32 1, %s422_s12  }
  0x9b   : > { %p620_p4 = scmp.ne.s32.totalorder %s615_s24, 0  ;;  %s198_s22 = scalar_lea.sflag [#allocation6], %s197_s4 }
  0x9d   : > { %p283_p5 = pnand %p287_p12, %p620_p4 }
  0x9f   : > { %p284_p7 = pneg %p283_p5 }
  0xa1   : > { %417 = dma.done.wait (%p284_p7), %s198_s22, 128  }
  0xa2   : > { %419 = vsyncadd (%p284_p7), %s198_s22, 4294967168  ;;  %p19_p8 = scmp.ge.s32.totalorder %s485_s17, 7   ;;  %s621_s12 = smov %s426_s13 }
  0xa3   : > { %s622_s13 = smov %s430_s14  ;;  %s623_s14 = smov %s497_s20 }
  0xa4   : > { %s624_s15 = smov %s485_s17  ;;  %21 = sbr.rel (!%p19_p8) target bundleno = 10 (0xa), region = 70 }
  0xa9   :  { %203 = vsyncpa [#allocation5], 1 }
  0xaa   :  { %205 = vsyncpa [#allocation5 + $0x1], 1 }
  0xab   :  { %206 = vsyncpa [#allocation6], 1 }
  0xac   :  { %208 = vsyncpa [#allocation6 + $0x1], 1 }

</bundles_post_ra>
